<compile_context>
chip_gen: v7x
topology: tpu7x:2x2x1
jax: 0.10.0
libtpu: 0.0.40
codegen_flags: <defaults>
</compile_context>

<pallas_src>
import jax
import jax.numpy as jnp
from jax.experimental import pallas as pl
from jax.experimental.pallas import tpu as pltpu

_MAX_LANE_WIDTH = 4096          # cap for the adaptive lane-dense slab width
_FALLBACK_LANE_WIDTH = 1024     # slab width for ragged (non-128-aligned) sizes
_TARGET_BLOCK_BYTES = 8 << 20   # ~8 MiB blocks; 2 in-bufs + 2 out-bufs ~= 32 MiB
_VMEM_LIMIT_BYTES = 48 << 20    # headroom on v7x (64 MiB phys), ample on v5e/v6e
_MIN_PALLAS_BYTES = 256 << 10   # below this, XLA's fused elementwise wins


def _square_kernel(x_ref, o_ref):
    x = x_ref[...]
    o_ref[...] = x * x


def _pick_lane_width(n: int):
    """Largest multiple of 128 (<= _MAX_LANE_WIDTH) that divides n, or None."""
    if n % 128 != 0:
        return None
    cap = min(_MAX_LANE_WIDTH, n)
    cap -= cap % 128
    for c in range(cap, 0, -128):
        if n % c == 0:
            return c
    return None  # unreachable: 128 always divides n here


def square(x: jax.Array, *, min_pallas_bytes: int = _MIN_PALLAS_BYTES) -> jax.Array:
    """Elementwise x**2 via a Pallas TPU kernel. Works for any shape/dtype."""
    orig_shape = x.shape
    dtype = x.dtype
    n = x.size
    itemsize = jnp.dtype(dtype).itemsize

    # Degenerate / tiny inputs: launch overhead dominates, let XLA fuse it.
    if n == 0 or n * itemsize < min_pallas_bytes:
        return x * x

    # Sublane packing per dtype: 8 for f32, 16 for bf16, 32 for int8.
    sublane = max(8, 32 // max(itemsize, 1))

    # Adaptive lane-dense slab width (no pad needed when it divides n).
    C = _pick_lane_width(n)
    padded = C is None
    if padded:
        C = _FALLBACK_LANE_WIDTH
    rows = pl.cdiv(n, C)

    flat = x.reshape(-1)
    if padded:
        # Only for ragged sizes with no 128-aligned factorization.
        flat = jnp.pad(flat, (0, rows * C - n))
    x2 = flat.reshape(rows, C)

    # Row tile: ~8 MiB blocks, sublane-aligned.
    tile_r = max(sublane, (_TARGET_BLOCK_BYTES // (C * itemsize)) // sublane * sublane)
    if rows >= 2 * sublane:
        # Ensure >= 2 blocks so both v7x TensorCores participate.
        half = ((pl.cdiv(rows, 2) + sublane - 1) // sublane) * sublane
        tile_r = min(tile_r, half)
    if tile_r >= rows:
        tile_r = rows  # single full-extent block (always legal)

    grid = (pl.cdiv(rows, tile_r),)  # ragged last block: masked by Pallas

    out = pl.pallas_call(
        _square_kernel,
        out_shape=jax.ShapeDtypeStruct((rows, C), dtype),
        grid=grid,
        in_specs=[pl.BlockSpec((tile_r, C), lambda i: (i, 0))],
        out_specs=pl.BlockSpec((tile_r, C), lambda i: (i, 0)),
        compiler_params=pltpu.CompilerParams(
            dimension_semantics=("parallel",),
            vmem_limit_bytes=_VMEM_LIMIT_BYTES,
        ),
    )(x2)

    out_flat = out.reshape(-1)
    if padded:
        out_flat = out_flat[:n]
    return out_flat.reshape(orig_shape)


if __name__ == "__main__":
    key = jax.random.PRNGKey(0)

    # Primary test: the module's implied NCHW shape (forced through Pallas).
    x = jax.random.normal(key, (2, 4, 16, 16), dtype=jnp.float32)
    y = square(x, min_pallas_bytes=0)
    jax.block_until_ready(y)
    ref = x ** 2
    assert y.shape == ref.shape and y.dtype == ref.dtype
    assert jnp.allclose(y, ref, atol=1e-6, rtol=1e-6)

    # Larger 128-aligned tensor: default path, no pad/slice, multi-block grid.
    k2 = jax.random.PRNGKey(1)
    x2 = jax.random.normal(k2, (4, 8, 64, 128), dtype=jnp.float32)
    y2 = square(x2)
    jax.block_until_ready(y2)
    assert jnp.allclose(y2, x2 ** 2, atol=1e-6, rtol=1e-6)

    # Ragged size (exercises the fallback pad + slice-back path).
    k3 = jax.random.PRNGKey(2)
    x3 = jax.random.normal(k3, (3, 5, 7, 11), dtype=jnp.float32)
    y3 = square(x3, min_pallas_bytes=0)
    jax.block_until_ready(y3)
    assert jnp.allclose(y3, x3 ** 2, atol=1e-6, rtol=1e-6)

    # bf16 sanity (sublane=16 path).
    k4 = jax.random.PRNGKey(3)
    x4 = jax.random.normal(k4, (8, 32, 32), dtype=jnp.bfloat16)
    y4 = square(x4, min_pallas_bytes=0)
    jax.block_until_ready(y4)
    assert jnp.allclose(
        y4.astype(jnp.float32), (x4 ** 2).astype(jnp.float32), atol=1e-2, rtol=1e-2
    )

    print("KERNEL_OK")
</pallas_src>

<mosaic_0001>
module attributes {stable_mosaic.version = 11 : i64} {
  func.func @_square_kernel(%arg0: i32, %arg1: memref<1x2048xf32, #tpu.memory_space<vmem>>, %arg2: memref<1x2048xf32, #tpu.memory_space<vmem>>) attributes {dimension_semantics = [#tpu.dimension_semantics<parallel>], iteration_bounds = array<i64: 1>, scalar_prefetch = 0 : i64, scratch_operands = 0 : i64, tpu.core_type = #tpu.core_type<tc>, window_params = [{transform_indices = @transform_0, window_bounds = array<i64: 1, 2048>}, {transform_indices = @transform_1, window_bounds = array<i64: 1, 2048>}]} {
    %c0 = arith.constant 0 : index
    %c0_0 = arith.constant 0 : index
    %0 = vector.load %arg1[%c0, %c0_0] : memref<1x2048xf32, #tpu.memory_space<vmem>>, vector<1x2048xf32>
    %1 = arith.mulf %0, %0 : vector<1x2048xf32>
    %c0_1 = arith.constant 0 : index
    %c0_2 = arith.constant 0 : index
    %2 = vector.load %arg2[%c0_1, %c0_2] : memref<1x2048xf32, #tpu.memory_space<vmem>>, vector<1x2048xf32>
    tpu.vector_store %arg2[%c0_1, %c0_2], %1 {strides = array<i32>} : memref<1x2048xf32, #tpu.memory_space<vmem>>, vector<1x2048xf32>,
    return
  }
  func.func @transform_0(%arg0: i32) -> (i32, i32) {
    %c0_i32 = arith.constant 0 : i32
    %c0_i32_0 = arith.constant 0 : i32
    return %arg0, %c0_i32 : i32, i32
  }
  func.func @transform_1(%arg0: i32) -> (i32, i32) {
    %c0_i32 = arith.constant 0 : i32
    %c0_i32_0 = arith.constant 0 : i32
    return %arg0, %c0_i32 : i32, i32
  }
}

</mosaic_0001>

<bundles_post_ra>
// kernel: tpu_custom_call.1
= control target key start
LH: loop header
LB: loop body
LE: loop exit
PB: predicated region body
PF: predicated region fallthrough
CT: control target
= control target key end

     0   :  { %6 = vsyncpa [#allocation3], 0  ;;  %s128_s0 = inlined_call_operand.hbm [shape: f32[1,2048], index: 0, kind: input, shape index: {}]   ;;  %s129_s1 = inlined_call_operand.hbm [shape: f32[1,2048], index: 1, kind: output, shape index: {}]  }
   0x1   :  { %7 = vsyncpa [#allocation4], 0  ;;  %s92_s6 = smov [#allocation2]   ;;  %s44_s10 = scalar_lea.hbm %s128_s0, 256 }
   0x2   :  { %s14_s7 = sshll.u32 %s92_s6, 4  ;;  %p45_p0 = scmp.ne.s32.totalorder %s128_s0, %s44_s10  ;;  %s15_s7 = int_to_ptr.vmem [resolvable:$true] %s14_s7 }
   0x3   :  { %p48_p1 = scmp.lt.u32.totalorder %s44_s10, %s128_s0 }
   0x5   :  { %p50_p2 = pnand %p48_p1, %p45_p0 }
   0x7   :  { %53 = shalt.err (!%p50_p2)
}
   0x8   :  { %s54_s15 = scalar_lea.vmem %s15_s7, 256  ;;  %p59_p4 = scmp.lt.s32.totalorder %s15_s7, %s15_s7 }
   0x9   :  { %p55_p3 = scmp.ne.s32.totalorder %s15_s7, %s54_s15  ;;  %p60_p5 = scmp.lt.s32.totalorder %s54_s15, %s54_s15 }
   0xb   :  { %p61_p6 = por %p60_p5, %p59_p4 }
   0xd   :  { %p62_p7 = pnand %p61_p6, %p55_p3 }
   0xf   :  { %65 = shalt.err (!%p62_p7)
}
  0x10   :  { %17 = dma.hbm_to_vmem [thread:$0]  %s128_s0, 256, %s15_s7, [#allocation3]  }
  0x11   :  { %88 = dma.done.wait [#allocation3], 256  }
  0x12   :  { %89 = vsyncadd [#allocation3], 4294967040  ;;  %s93_s18 = smov [#allocation5]   ;;  %v21_v0 = vld [vmem:[#allocation2] sm:$0xff]  ;;  %v22_v1 = vld [vmem:[#allocation2 + $0x8] sm:$0xff] }
  0x13   :  { %s33_s19 = sshll.u32 %s93_s18, 4  ;;  %v23_v2 = vmul.f32 %v21_v0, %v21_v0  ;;  %v24_v3 = vmul.f32 %v22_v1, %v22_v1  ;;  %s34_s19 = int_to_ptr.vmem [resolvable:$true] %s33_s19 }
  0x14   :  { %s66_s20 = scalar_lea.vmem %s34_s19, 256  ;;  %p71_p9 = scmp.lt.s32.totalorder %s34_s19, %s34_s19 }
  0x15   :  { %25 = vst [vmem:[#allocation5] sm:$0xff] %v23_v2  ;;  %26 = vst [vmem:[#allocation5 + $0x8] sm:$0xff] %v24_v3  ;;  %p67_p8 = scmp.ne.s32.totalorder %s34_s19, %s66_s20  ;;  %p72_p10 = scmp.lt.s32.totalorder %s66_s20, %s66_s20 }
  0x17   :  { %p73_p11 = por %p72_p10, %p71_p9 }
  0x19   :  { %p74_p12 = pnand %p73_p11, %p67_p8 }
  0x1b   :  { %77 = shalt.err (!%p74_p12)
}
  0x1c   :  { %s78_s22 = scalar_lea.hbm %s129_s1, 256 }
  0x1d   :  { %p79_p13 = scmp.ne.s32.totalorder %s129_s1, %s78_s22  ;;  %p82_p0 = scmp.lt.u32.totalorder %s78_s22, %s129_s1 }
  0x1f   :  { %p84_p1 = pnand %p82_p0, %p79_p13 }
  0x21   :  { %87 = shalt.err (!%p84_p1)
}
  0x22   :  { %36 = dma.vmem_to_hbm [thread:$0]  %s34_s19, 256, %s129_s1, [#allocation4]  }
  0x23   :  { %90 = dma.done.wait [#allocation4], 256  }
  0x24   :  { %91 = vsyncadd [#allocation4], 4294967040 }
  0x25   :  { %40 = vsyncpa [#allocation3], 1 }
  0x26   :  { %41 = vsyncpa [#allocation4], 1 }

</bundles_post_ra>
